<compile_context>
chip_gen: v7x
topology: tpu7x:2x2x1
jax: 0.10.0
libtpu: 0.0.40
codegen_flags: <defaults>
</compile_context>

<pallas_src>
import functools
import math

import jax
import jax.numpy as jnp
from jax import lax
from jax.experimental import pallas as pl
from jax.experimental.pallas import tpu as pltpu


def gaussian_1d(ksize: int, sigma: float) -> jnp.ndarray:
    """getGaussiankernel(ksize, sigma) as a flat (ksize,) f32 vector (sum-normalized).

    Matches the PyTorch helper exactly: taps at integer offsets
    arange(-(K-1)//2, (K-1)//2 + 1) — NOT cv2's half-integer centering — and the caller
    passes sigma = sf // 1.5 with the same floor-division the PyTorch module uses.
    """
    lo = -(ksize - 1) // 2
    hi = (ksize - 1) // 2 + 1
    x = jnp.arange(lo, hi, dtype=jnp.float32)
    k = jnp.exp(-0.5 * jnp.square(x / sigma))
    return k / jnp.sum(k)


def _downsample_matrix(n_in: int, n_out: int, stride: int, k1: jnp.ndarray) -> jnp.ndarray:
    """(n_out, n_in) matrix M with M[i, i*stride + t] = k1[t]; M @ v == valid strided 1-D conv."""
    ktaps = k1.shape[0]
    rows = jnp.arange(n_out, dtype=jnp.int32)[:, None]                  # (n_out, 1)
    cols = rows * stride + jnp.arange(ktaps, dtype=jnp.int32)[None, :]  # (n_out, K)
    m = jnp.zeros((n_out, n_in), dtype=jnp.float32)
    return m.at[rows, cols].set(jnp.broadcast_to(k1[None, :], (n_out, ktaps)))


def _spa_down_kernel(x_ref, qt_ref, r_ref, o_ref, z_ref, *, block_c: int, h: int):
    """Per grid step: Z = X2d @ Q^T (one block-wide matmul), then Y[c] = R @ Z[c].

    x_ref : (block_c*H, W)    x.dtype (channels flattened into the sublane dim)
    qt_ref: (W, Wo)           x.dtype, VMEM-resident (constant index_map)
    r_ref : (Ho, H)           x.dtype, VMEM-resident (constant index_map)
    o_ref : (block_c, Ho, Wo) x.dtype
    z_ref : (block_c*H, Wo)   x.dtype VMEM scratch
    """
    # Q side: one big MXU matmul, M = block_c*H, native input dtype, f32 accumulation.
    z_ref[...] = jnp.dot(
        x_ref[...], qt_ref[...], preferred_element_type=jnp.float32
    ).astype(z_ref.dtype)

    r = r_ref[...]  # hoisted: loaded once per grid step

    # R side on the already W-reduced intermediate (~1/(sf-1) of the FLOPs).
    def body(c, carry):
        if h % 8 == 0:
            start = pl.multiple_of(c * h, 8)
        else:
            start = c * h
        zc = z_ref[pl.ds(start, h), :]                                  # (H, Wo)
        yc = jnp.dot(r, zc, preferred_element_type=jnp.float32)        # (Ho, Wo), f32 acc
        o_ref[c] = yc.astype(o_ref.dtype)
        return carry

    lax.fori_loop(0, block_c, body, 0, unroll=block_c <= 8)


def _choose_block_c(C, H, W, Ho, Wo, itemsize, vmem_budget):
    """Largest channel block that fits the VMEM budget, keeps >=2 grid steps, and keeps
    the flattened (block_c*H, W) input block sublane-tile aligned."""
    sublane = max(8, 32 // max(itemsize, 1))                 # 8 (f32), 16 (bf16/f16), 32 (i8)
    per_c = (2 * H * W + 2 * Ho * Wo + H * Wo) * itemsize     # dbl-buffered in/out + z scratch
    const = 2 * (Ho * H + W * Wo) * itemsize                  # resident R / Q^T (dbl-buffered)
    budget = max(per_c, vmem_budget - const)
    bc = min(C, max(1, budget // per_c))
    # keep the input slab per block around the ~16 MiB DMA sweet spot
    bc = min(bc, max(1, (16 * 1024 * 1024) // max(1, H * W * itemsize)))
    # >= 2 grid steps so v7x's two TensorCores both get work
    if C >= 2:
        bc = min(bc, -(-C // 2))
    bc = max(1, bc)
    # flattened input block: (bc*H) must be a multiple of the sublane tile unless bc == C
    if bc < C and (bc * H) % sublane != 0:
        align = sublane // math.gcd(H, sublane)
        bc_al = (bc // align) * align
        bc = bc_al if bc_al >= 1 else min(C, align)
    if bc < C and (bc * H) % sublane != 0:
        bc = C                                               # full-dim block is always legal
    return int(max(1, min(bc, C)))


def spa_down(x: jnp.ndarray, sf: int) -> jnp.ndarray:
    """Pallas implementation of SpaDown(sf, predefine=None, iscal=False).forward(x)."""
    assert sf >= 2, "Conv2d stride is sf-1, so sf must be >= 2"
    assert x.ndim == 4 and x.shape[0] == 1, "module semantics require batch == 1"
    assert jnp.issubdtype(x.dtype, jnp.floating), "floating-point input expected"
    _, C, H, W = x.shape
    K, S = sf, sf - 1
    assert H >= K and W >= K, "input spatial dims must be >= sf"
    Ho = (H - K) // S + 1
    Wo = (W - K) // S + 1

    k1 = gaussian_1d(sf, sf // 1.5)                         # sigma = sf // 1.5 (PyTorch floor-div)
    r = _downsample_matrix(H, Ho, S, k1).astype(x.dtype)      # (Ho, H)
    qt = _downsample_matrix(W, Wo, S, k1).T.astype(x.dtype)   # (W, Wo)

    # Generation-aware VMEM budget: scoped limit ~3/4 of physical VMEM
    # (~48 MiB on v7x's 64 MiB, ~96 MiB on v5e/v6e's 128 MiB); blocks use ~80% of it.
    try:
        vmem_cap = int(pltpu.get_tpu_info().vmem_capacity_bytes)
    except Exception:
        vmem_cap = 64 * 1024 * 1024
    vmem_limit = (min(vmem_cap, 128 * 1024 * 1024) * 3) // 4
    vmem_budget = (vmem_limit * 4) // 5

    block_c = _choose_block_c(C, H, W, Ho, Wo, x.dtype.itemsize, vmem_budget)
    grid = (pl.cdiv(C, block_c),)

    x2d = x[0].reshape(C * H, W)                            # free row-major reshape in HBM

    kernel_fn = functools.partial(_spa_down_kernel, block_c=block_c, h=H)

    out_chw = pl.pallas_call(
        kernel_fn,
        out_shape=jax.ShapeDtypeStruct((C, Ho, Wo), x.dtype),
        grid=grid,
        in_specs=[
            pl.BlockSpec((block_c * H, W), lambda i: (i, 0)),
            pl.BlockSpec((W, Wo), lambda i: (0, 0)),        # constant block -> fetched once
            pl.BlockSpec((Ho, H), lambda i: (0, 0)),        # constant block -> fetched once
        ],
        out_specs=pl.BlockSpec((block_c, Ho, Wo), lambda i: (i, 0, 0)),
        scratch_shapes=[pltpu.VMEM((block_c * H, Wo), x.dtype)],
        compiler_params=pltpu.CompilerParams(
            dimension_semantics=("parallel",),
            vmem_limit_bytes=int(vmem_limit),
        ),
    )(x2d, qt, r)

    return out_chw[None]                                    # back to (1, C, Ho, Wo)


def _reference(x: jnp.ndarray, sf: int) -> jnp.ndarray:
    """Pure-JAX reference (lax conv) mirroring the PyTorch forward."""
    k1 = gaussian_1d(sf, sf // 1.5).reshape(-1, 1)
    w = (k1 @ k1.T)[None, None]                              # (O=1, I=1, K, K)
    xt = jnp.transpose(x, (1, 0, 2, 3)).astype(jnp.float32)  # (C, 1, H, W)
    y = lax.conv_general_dilated(
        xt, w,
        window_strides=(sf - 1, sf - 1),
        padding="VALID",
        dimension_numbers=("NCHW", "OIHW", "NCHW"),
        precision=lax.Precision.HIGHEST,
    )
    return jnp.transpose(y, (1, 0, 2, 3))                    # (1, C, Ho, Wo)


if __name__ == "__main__":
    # f32 check against a lax-conv reference.
    sf = 4
    x = jax.random.normal(jax.random.PRNGKey(0), (1, 4, 16, 16), dtype=jnp.float32)
    out = jax.block_until_ready(spa_down(x, sf))
    ref = jax.block_until_ready(_reference(x, sf))
    assert out.shape == ref.shape, (out.shape, ref.shape)
    err = float(jnp.max(jnp.abs(out.astype(jnp.float32) - ref)))
    assert err < 1e-4, err

    # bf16 smoke test: native bf16 MXU path, bf16 output, loose tolerance vs f32 reference.
    sf2 = 3
    xb = jax.random.normal(jax.random.PRNGKey(0), (1, 6, 32, 32), dtype=jnp.bfloat16)
    outb = jax.block_until_ready(spa_down(xb, sf2))
    refb = jax.block_until_ready(_reference(xb.astype(jnp.float32), sf2))
    assert outb.shape == refb.shape and outb.dtype == jnp.bfloat16, (outb.shape, outb.dtype)
    errb = float(jnp.max(jnp.abs(outb.astype(jnp.float32) - refb)))
    assert errb < 0.15, errb

    print("KERNEL_OK")
</pallas_src>

<mosaic_0001>
module attributes {stable_mosaic.version = 11 : i64} {
  func.func @_spa_down_kernel(%arg0: i32, %arg1: memref<32x16xf32, #tpu.memory_space<vmem>>, %arg2: memref<16x5xf32, #tpu.memory_space<vmem>>, %arg3: memref<5x16xf32, #tpu.memory_space<vmem>>, %arg4: memref<2x5x5xf32, #tpu.memory_space<vmem>>, %arg5: memref<32x5xf32, #tpu.memory_space<vmem>>) attributes {dimension_semantics = [#tpu.dimension_semantics<parallel>], iteration_bounds = array<i64: 2>, scalar_prefetch = 0 : i64, scratch_operands = 1 : i64, tpu.core_type = #tpu.core_type<tc>, window_params = [{transform_indices = @transform_0, window_bounds = array<i64: 32, 16>}, {pipeline_mode = #tpu.pipeline_mode<synchronous>, transform_indices = @transform_1, window_bounds = array<i64: 16, 5>}, {pipeline_mode = #tpu.pipeline_mode<synchronous>, transform_indices = @transform_2, window_bounds = array<i64: 5, 16>}, {transform_indices = @transform_3, window_bounds = array<i64: 2, 5, 5>}]} {
    %c0 = arith.constant 0 : index
    %c0_0 = arith.constant 0 : index
    %0 = vector.load %arg1[%c0, %c0_0] : memref<32x16xf32, #tpu.memory_space<vmem>>, vector<32x16xf32>
    %c0_1 = arith.constant 0 : index
    %c0_2 = arith.constant 0 : index
    %1 = vector.load %arg2[%c0_1, %c0_2] : memref<16x5xf32, #tpu.memory_space<vmem>>, vector<16x5xf32>
    %cst = arith.constant dense<0.000000e+00> : vector<32x5xf32>
    %2 = tpu.matmul %0, %1, %cst {dimension_numbers = #tpu.dot_dimension_numbers<[1], [0], [0], [1], [0, 0, 1, 1], [], []>} : vector<32x16xf32>, vector<16x5xf32>, vector<32x5xf32> -> vector<32x5xf32>
    %c0_3 = arith.constant 0 : index
    %c0_4 = arith.constant 0 : index
    %3 = vector.load %arg5[%c0_3, %c0_4] : memref<32x5xf32, #tpu.memory_space<vmem>>, vector<32x5xf32>
    tpu.vector_store %arg5[%c0_3, %c0_4], %2 {strides = array<i32>} : memref<32x5xf32, #tpu.memory_space<vmem>>, vector<32x5xf32>,
    %c0_5 = arith.constant 0 : index
    %c0_6 = arith.constant 0 : index
    %4 = vector.load %arg3[%c0_5, %c0_6] : memref<5x16xf32, #tpu.memory_space<vmem>>, vector<5x16xf32>
    %c0_i32 = arith.constant 0 : i32
    %c16_i32 = arith.constant 16 : i32
    %5 = arith.muli %c0_i32, %c16_i32 : i32
    %6 = tpu.assume_multiple %5, 8 : i32
    %7 = arith.index_cast %6 : i32 to index
    %c0_7 = arith.constant 0 : index
    %8 = vector.load %arg5[%7, %c0_7] : memref<32x5xf32, #tpu.memory_space<vmem>>, vector<16x5xf32>
    %cst_8 = arith.constant dense<0.000000e+00> : vector<5x5xf32>
    %9 = tpu.matmul %4, %8, %cst_8 {dimension_numbers = #tpu.dot_dimension_numbers<[1], [0], [0], [1], [0, 0, 1, 1], [], []>} : vector<5x16xf32>, vector<16x5xf32>, vector<5x5xf32> -> vector<5x5xf32>
    %10 = arith.index_cast %c0_i32 : i32 to index
    %c0_9 = arith.constant 0 : index
    %c0_10 = arith.constant 0 : index
    %11 = vector.load %arg4[%10, %c0_9, %c0_10] : memref<2x5x5xf32, #tpu.memory_space<vmem>>, vector<1x5x5xf32>
    %12 = vector.shape_cast %11 : vector<1x5x5xf32> to vector<5x5xf32>
    %13 = vector.shape_cast %9 : vector<5x5xf32> to vector<1x5x5xf32>
    tpu.vector_store %arg4[%10, %c0_9, %c0_10], %13 {strides = array<i32>} : memref<2x5x5xf32, #tpu.memory_space<vmem>>, vector<1x5x5xf32>,
    %c1_i32 = arith.constant 1 : i32
    %c16_i32_11 = arith.constant 16 : i32
    %14 = arith.muli %c1_i32, %c16_i32_11 : i32
    %15 = tpu.assume_multiple %14, 8 : i32
    %16 = arith.index_cast %15 : i32 to index
    %c0_12 = arith.constant 0 : index
    %17 = vector.load %arg5[%16, %c0_12] : memref<32x5xf32, #tpu.memory_space<vmem>>, vector<16x5xf32>
    %cst_13 = arith.constant dense<0.000000e+00> : vector<5x5xf32>
    %18 = tpu.matmul %4, %17, %cst_13 {dimension_numbers = #tpu.dot_dimension_numbers<[1], [0], [0], [1], [0, 0, 1, 1], [], []>} : vector<5x16xf32>, vector<16x5xf32>, vector<5x5xf32> -> vector<5x5xf32>
    %19 = arith.index_cast %c1_i32 : i32 to index
    %c0_14 = arith.constant 0 : index
    %c0_15 = arith.constant 0 : index
    %20 = vector.load %arg4[%19, %c0_14, %c0_15] : memref<2x5x5xf32, #tpu.memory_space<vmem>>, vector<1x5x5xf32>
    %21 = vector.shape_cast %20 : vector<1x5x5xf32> to vector<5x5xf32>
    %22 = vector.shape_cast %18 : vector<5x5xf32> to vector<1x5x5xf32>
    tpu.vector_store %arg4[%19, %c0_14, %c0_15], %22 {strides = array<i32>} : memref<2x5x5xf32, #tpu.memory_space<vmem>>, vector<1x5x5xf32>,
    %c2_i32 = arith.constant 2 : i32
    return
  }
  func.func @transform_0(%arg0: i32) -> (i32, i32) {
    %c0_i32 = arith.constant 0 : i32
    %c0_i32_0 = arith.constant 0 : i32
    return %arg0, %c0_i32 : i32, i32
  }
  func.func @transform_1(%arg0: i32) -> (i32, i32) {
    %c0_i32 = arith.constant 0 : i32
    %c0_i32_0 = arith.constant 0 : i32
    %c0_i32_1 = arith.constant 0 : i32
    return %c0_i32, %c0_i32_0 : i32, i32
  }
  func.func @transform_2(%arg0: i32) -> (i32, i32) {
    %c0_i32 = arith.constant 0 : i32
    %c0_i32_0 = arith.constant 0 : i32
    %c0_i32_1 = arith.constant 0 : i32
    return %c0_i32, %c0_i32_0 : i32, i32
  }
  func.func @transform_3(%arg0: i32) -> (i32, i32, i32) {
    %c0_i32 = arith.constant 0 : i32
    %c0_i32_0 = arith.constant 0 : i32
    %c0_i32_1 = arith.constant 0 : i32
    return %arg0, %c0_i32, %c0_i32_0 : i32, i32, i32
  }
}

</mosaic_0001>

<bundles_post_ra>
// kernel: tpu_custom_call.1
= control target key start
LH: loop header
LB: loop body
LE: loop exit
PB: predicated region body
PF: predicated region fallthrough
CT: control target
= control target key end

     0   :  { %s598_s12 = smov 0   ;;  %s636_s0 = inlined_call_operand.vmem [shape: f32[64,16], index: 0, kind: input, shape index: {}]   ;;  %s637_s1 = inlined_call_operand.vmem [shape: f32[16,5], index: 1, kind: input, shape index: {}]   ;;  %s638_s2 = inlined_call_operand.vmem [shape: f32[5,16], index: 2, kind: input, shape index: {}]   ;;  %s639_s3 = inlined_call_operand.vmem [shape: f32[4,5,5], index: 3, kind: output, shape index: {}]  }
   0x1 LB: > { %s492_s13 = sadd.s32 4294967295, %s573_s12   ;;  %p496_p0 = scmp.ge.s32.totalorder %s573_s12, 1  ;;  %s573_s12 = sphi %s598_s12, %s13_s12  }
   0x2   : > { %p138_p1 = scmp.lt.s32.totalorder %s573_s12, 3 }
   0x4   : > { %p139_p2 = pnand %p496_p0, %p138_p1 }
   0x5   : > { %v178_v0 = vld [vmem:[%s637_s1] sm:$0xff] (!%p139_p2)  ;;  %v179_v1 = vld [vmem:[%s637_s1 + $0x8] sm:$0xff] (!%p139_p2)  ;;  %s497_s18 = sshll.u32 (!%p139_p2), %s492_s13, 2  ;;  %vm180_vm0 = vcmask (!%p139_p2), 130048   ;;  %v575_v7 = vmov (!%p139_p2), 0.0|0.0   ;;  %vm576_vm1 = vmmov (!%p139_p2), 0  }
   0x6   : > { %142 = sbr.rel (%p139_p2) target bundleno = 461 (0x1cd), region = 32  ;;  %v546_v2 = vpack.c.bf16 (!%p139_p2), %v179_v1, %v178_v0  ;;  %p163_p3 = scmp.lt.s32.totalorder (!%p139_p2), %s497_s18, 7  ;;  %550 = vmatprep.subr.bf16.mxu1 (!%p139_p2), %v575_v7  ;;  %v577_v8 = vmov (!%p139_p2), 0.0   ;;  %vm278_vm2 = vcmask (!%p139_p2), 39936   ;;  %v283_v16 = vld [vmem:[%s638_s2] sm:$0x1f] (!%p139_p2) }
   0x7   : > { %536 = vmatprep.mubr.msk.f32.mxu1 (!%p139_p2), %vm576_vm1, %v577_v8  ;;  %s499_s25 = sshll.u32 (!%p139_p2), %s492_s13, 1  ;;  %vm359_vm3 = vcmask (!%p139_p2), 36864  }
   0x8   : > { %547 = vmatprep.subr.bf16.mxu0 (!%p139_p2), %v546_v2  ;;  %p169_p4 = scmp.lt.s32.totalorder (!%p139_p2), %s499_s25, 3 }
   0x9   : > { %549 = vmatpush3.bf16.msra.mxu0 (!%p139_p2), %v546_v2 }
   0xd   : > { %s641_s18 = smov (!%p163_p3, %s497_s18), 7  ;;  %s643_s25 = smov (!%p169_p4, %s499_s25), 3 }
   0xe   : > { %s498_s19 = sshll.u32 %s641_s18, 3  ;;  %s500_s26 = sshll.u32 %s643_s25, 3 }
   0xf   : > { %s166_s22 = scalar_lea.vmem %s636_s0, %s498_s19  ;;  %s172_s29 = scalar_lea.vmem %s639_s3, %s500_s26 }
  0x10   : > { %v174_v3 = vld [vmem:[%s166_s22] sm:$0xff]  ;;  %v175_v4 = vld [vmem:[%s166_s22 + $0x8] sm:$0xff]  ;;  %v176_v5 = vld [vmem:[%s166_s22 + $0x10] sm:$0xff] }
  0x11   : > { %526 = vmatprep.mubr.msk.f32.mxu0 %vm180_vm0, %v174_v3  ;;  %v177_v6 = vld [vmem:[%s166_s22 + $0x18] sm:$0xff] }
  0x12   : > { %527 = vmatmul.mubr.msk.f32.vlgmr.msra.gmra.mrb[0].mxu0 %vm180_vm0, %v175_v4 }
  0x13   : > { %529 = vmatprep.mubr.msk.f32.mxu0 %vm180_vm0, %v176_v5 }
  0x16   : > { %530 = vmatmul.mubr.msk.f32.gmra.mrb[2].mxu0 %vm180_vm0, %v177_v6 }
  0xe5   : > { %v528_v9 = vpop.f32.mrb[0].mxu0 }
  0xe6   : > { %280 = vst.msk [vmem:[#allocation2 + $0x8] sm:$0xff] %vm278_vm2, %v528_v9  ;;  %v259_v10 = vpop.f32.mrb[1].mxu0 }
  0xe7   : > { %279 = vst.msk [vmem:[#allocation2] sm:$0xff] %vm278_vm2, %v259_v10 }
  0xe9   : > { %v531_v11 = vpop.f32.mrb[2].mxu0 }
  0xea   : > { %282 = vst.msk [vmem:[#allocation2 + $0x18] sm:$0xff] %vm278_vm2, %v531_v11  ;;  %v269_v12 = vpop.f32.mrb[3].mxu0 }
  0xeb   : > { %281 = vst.msk [vmem:[#allocation2 + $0x10] sm:$0xff] %vm278_vm2, %v269_v12 }
  0xed   : > { %v285_v13 = vld [vmem:[#allocation2 + $0x8] sm:$0xff] }
  0xee   : > { %v284_v14 = vld [vmem:[#allocation2] sm:$0xff] }
  0xef   : > { %v551_v15 = vpack.c.bf16 %v285_v13, %v284_v14 }
  0xf1   : > { %552 = vmatpush3.bf16.msra.mxu1 %v551_v15  ;;  %v363_v17 = vld [vmem:[#allocation2 + $0x18] sm:$0xff] }
  0xf2   : > { %553 = vmatprep.subr.bf16.mxu1 %v575_v7  ;;  %v362_v18 = vld [vmem:[#allocation2 + $0x10] sm:$0xff] }
  0xf3   : > { %v554_v19 = vpack.c.bf16 %v363_v17, %v362_v18 }
  0xf4   : > { %537 = vmatmul.mubr.msk.f32.vlgmr.msra.gmra.mrb[0].mxu1 %vm180_vm0, %v283_v16 }
  0xf5   : > { %555 = vmatpush3.bf16.msra.mxu1 %v554_v19  ;;  %543 = vmatprep.mubr.msk.f32.mxu1 %vm576_vm1, %v577_v8 }
  0xf8   : > { %544 = vmatmul.mubr.msk.f32.vlgmr.msra.gmra.mrb[2].mxu1 %vm180_vm0, %v283_v16 }
 0x1c7   : > { %v355_v20 = vpop.f32.mrb[0].mxu1 }
 0x1c8   : > { %360 = vst.msk [vmem:[%s172_s29] sm:$0x1f] %vm359_vm3, %v355_v20  ;;  %v538_v21 = vpop.f32.mrb[1].mxu1 }
 0x1cb   : > { %v430_v22 = vpop.f32.mrb[2].mxu1 }
 0x1cc   : > { %507 = vst.msk [vmem:[%s172_s29 + $0x8] sm:$0x1f] %vm359_vm3, %v430_v22  ;;  %v545_v23 = vpop.f32.mrb[3].mxu1 }
 0x1cd PF: > { %s13_s12 = sadd.s32 1, %s573_s12  }
 0x1ce   : > { %p10_p5 = scmp.ge.s32.totalorder %s13_s12, 4  }
 0x1d0   :  { %12 = sbr.rel (!%p10_p5) target bundleno = 1 (0x1), region = 64 }

</bundles_post_ra>
